<compile_context>
chip_gen: v5e
topology: v5e:2x2
jax: 0.10.0
libtpu: 0.0.40
codegen_flags: <defaults>
</compile_context>

<pallas_src>
import functools

import numpy as np

import jax
import jax.numpy as jnp
from jax import lax
from jax.experimental import pallas as pl
from jax.experimental.pallas import tpu as pltpu


def _round_up(x, m):
    return ((x + m - 1) // m) * m


def _cdiv(a, b):
    return -(-a // b)


def _softplus(x):
    # numerically-stable softplus = log(1 + exp(x)), f32
    return jnp.maximum(x, 0.0) + jnp.log1p(jnp.exp(-jnp.abs(x)))


# ---------------------------------------------------------------------------
# Kernel: the whole MLP hot path in one pallas_call.
# refs layout:
#   x_ref,
#   (w_i, b_i) * n_hidden_layers,   # lane-padded hidden layers (VMEM-resident)
#   w_head, b_head,                 # fused [mu | log_sigma | 0-pad] head
#   out_ref                         # [tile_m, head_pad] combined output
# ---------------------------------------------------------------------------
def _decoder_kernel(n_hidden_layers, output_dim, sig_start, aligned_head, *refs):
    x_ref = refs[0]
    idx = 1

    h = x_ref[...]
    for _ in range(n_hidden_layers):
        w_ref, b_ref = refs[idx], refs[idx + 1]
        idx += 2
        z = (
            jnp.dot(h.astype(w_ref.dtype), w_ref[...],
                    preferred_element_type=jnp.float32)
            + b_ref[...]
        )
        h = jnp.maximum(z, 0.0)   # bias add + ReLU stay f32 (v5e VPU has no bf16)

    w_head_ref, b_head_ref, out_ref = refs[idx], refs[idx + 1], refs[idx + 2]
    head = (
        jnp.dot(h.astype(w_head_ref.dtype), w_head_ref[...],
                preferred_element_type=jnp.float32)
        + b_head_ref[...]
    )

    if aligned_head:
        # mu block in cols [0, sig_start), sigma block in [sig_start, 2*sig_start).
        # Static 128-aligned slices: softplus/EUP work only over the sigma block.
        sigma = 0.1 + 0.9 * _softplus(head[:, sig_start:])
        out_ref[:, :sig_start] = head[:, :sig_start].astype(out_ref.dtype)
        out_ref[:, sig_start:] = sigma.astype(out_ref.dtype)
    else:
        # Compact layout (small output_dim): mu in [0, OD), sigma in [OD, 2*OD).
        col = lax.broadcasted_iota(jnp.int32, head.shape, 1)
        is_sigma = jnp.logical_and(col >= sig_start, col < sig_start + output_dim)
        sigma = 0.1 + 0.9 * _softplus(head)
        out_ref[...] = jnp.where(is_sigma, sigma, head).astype(out_ref.dtype)


# ---------------------------------------------------------------------------
# One-time parameter preparation (hoisted out of the forward path).
# ---------------------------------------------------------------------------
def prepare_decoder_params(params, *, use_bf16=True, out_dtype=jnp.float32):
    """Pads weights to lane-dense shapes and fuses the mu|sigma head once.

    Call this once per parameter set and reuse the returned bundle for every
    `decoder_forward` call.  `use_bf16=True` (default) stores matmul operands
    in bfloat16 (f32 accumulation in-kernel); use `use_bf16=False` for
    bit-tight f32 math.  `out_dtype` controls the kernel's output slab dtype
    (bf16 halves HBM writeback if downstream tolerates it).
    """
    compute_dtype = jnp.bfloat16 if use_bf16 else jnp.float32
    row_align = 16 if use_bf16 else 8

    input_dim = params["input_dim"]
    hidden_ws, hidden_bs = params["hidden_ws"], params["hidden_bs"]
    w_mu, b_mu = params["w_mu"], params["b_mu"]
    w_sg, b_sg = params["w_sigma"], params["b_sigma"]
    output_dim = w_mu.shape[1]

    # First-layer fan-in: only pad to the sublane pack (tiny), not to 128.
    k_pad = _round_up(input_dim, row_align)
    hidden_pads = [_round_up(w.shape[1], 128) for w in hidden_ws]
    fan_ins = [k_pad] + hidden_pads

    # Head layout: block-aligned (mu | sigma each in their own 128-block) when
    # 2*OD > 128; compact [mu | sigma | pad] in one 128-block otherwise.
    aligned_head = 2 * output_dim > 128
    if aligned_head:
        od_pad = _round_up(output_dim, 128)
        head_pad, sig_start = 2 * od_pad, od_pad
    else:
        head_pad, sig_start = 128, output_dim

    ws_p, bs_p = [], []
    for i, (w, b) in enumerate(zip(hidden_ws, hidden_bs)):
        wp = jnp.zeros((fan_ins[i], hidden_pads[i]), compute_dtype)
        wp = wp.at[:w.shape[0], :w.shape[1]].set(w.astype(compute_dtype))
        bp = jnp.zeros((1, hidden_pads[i]), jnp.float32)
        bp = bp.at[:, :b.shape[1]].set(b.astype(jnp.float32))
        ws_p.append(wp)
        bs_p.append(bp)

    w_head = jnp.zeros((fan_ins[-1], head_pad), compute_dtype)
    w_head = w_head.at[:w_mu.shape[0], :output_dim].set(w_mu.astype(compute_dtype))
    w_head = w_head.at[:w_sg.shape[0], sig_start:sig_start + output_dim].set(
        w_sg.astype(compute_dtype))
    b_head = jnp.zeros((1, head_pad), jnp.float32)
    b_head = b_head.at[:, :output_dim].set(b_mu.astype(jnp.float32))
    b_head = b_head.at[:, sig_start:sig_start + output_dim].set(
        b_sg.astype(jnp.float32))

    return {
        "input_dim": input_dim,
        "output_dim": output_dim,
        "n_layers": len(hidden_ws),
        "k_pad": k_pad,
        "hidden_pads": hidden_pads,
        "head_pad": head_pad,
        "sig_start": sig_start,
        "aligned_head": aligned_head,
        "compute_dtype": compute_dtype,
        "out_dtype": np.dtype(out_dtype),
        "row_align": row_align,
        "ws": ws_p,
        "bs": bs_p,
        "w_head": w_head,
        "b_head": b_head,
    }


# ---------------------------------------------------------------------------
# Probe: is pipeline_mode=pl.Buffered(1) supported for constant-index blocks?
# Single-buffering the VMEM-resident weights halves their VMEM footprint.
# ---------------------------------------------------------------------------
def _probe_kernel(x_ref, o_ref):
    o_ref[...] = x_ref[...] + 1.0


@functools.lru_cache(maxsize=None)
def _single_buffered_weights_supported():
    try:
        x = jnp.arange(8 * 128, dtype=jnp.float32).reshape(8, 128)
        fn = pl.pallas_call(
            _probe_kernel,
            out_shape=jax.ShapeDtypeStruct((8, 128), jnp.float32),
            grid_spec=pltpu.PrefetchScalarGridSpec(
                num_scalar_prefetch=0,
                grid=(2,),
                in_specs=[pl.BlockSpec((8, 128), lambda i: (0, 0),
                                       pipeline_mode=pl.Buffered(1))],
                out_specs=pl.BlockSpec((8, 128), lambda i: (0, 0)),
            ),
        )
        out = jax.block_until_ready(fn(x))
        return bool(jnp.allclose(out, x + 1.0))
    except Exception:
        # Older/newer JAX without pipeline_mode support: fall back silently.
        return False


# ---------------------------------------------------------------------------
# Forward pass
# ---------------------------------------------------------------------------
def decoder_forward(prepared, target_x, stochastic_rep, deterministic_rep=None,
                    *, tile_m=512, vmem_budget_bytes=24 * 1024 * 1024):
    """Runs the Decoder forward pass with a prepared param bundle.

    Returns (mu, sigma) shaped [*leading, num_points, output_dim].
    """
    if deterministic_rep is not None:
        hidden = jnp.concatenate(
            (stochastic_rep, deterministic_rep, target_x), axis=-1)
    else:
        hidden = jnp.concatenate((stochastic_rep, target_x), axis=-1)

    input_shape = hidden.shape
    input_dim = input_shape[-1]
    assert input_dim == prepared["input_dim"], (
        "You must match the dimension of input_dim and representations + target_x")

    compute_dtype = prepared["compute_dtype"]
    out_dtype = prepared["out_dtype"]
    k_pad = prepared["k_pad"]
    head_pad = prepared["head_pad"]
    output_dim = prepared["output_dim"]
    sig_start = prepared["sig_start"]
    row_align = prepared["row_align"]
    n_layers = prepared["n_layers"]
    ws_p, bs_p = prepared["ws"], prepared["bs"]
    w_head, b_head = prepared["w_head"], prepared["b_head"]

    x2d = hidden.reshape(-1, input_dim).astype(compute_dtype)
    m = x2d.shape[0]

    # ---- row-tile selection: VMEM budget + keep both v7x TCs busy ----
    weight_bytes = sum(int(w.size) * w.dtype.itemsize for w in ws_p + [w_head])
    bias_bytes = sum(int(b.size) * b.dtype.itemsize for b in bs_p + [b_head])
    resident_bytes = 2 * (weight_bytes + bias_bytes)   # worst case: double-buffered
    per_row_bytes = (
        2 * (k_pad * np.dtype(compute_dtype).itemsize           # x tile x2 bufs
             + head_pad * np.dtype(out_dtype).itemsize)         # out tile x2 bufs
        + 2 * max(prepared["hidden_pads"] + [head_pad]) * 4     # f32 activations
    )
    avail = vmem_budget_bytes - resident_bytes
    tm_budget = max(row_align,
                    (avail // max(per_row_bytes, 1)) // row_align * row_align)

    tile_m = max(row_align, min(_round_up(tile_m, row_align), tm_budget))
    m_aligned = _round_up(m, row_align)
    if m_aligned <= tile_m:
        if m_aligned >= 256:
            # >=2 grid steps so ("parallel",) can shard across v7x's 2 TensorCores.
            tm = _round_up(_cdiv(m_aligned, 2), row_align)
        else:
            tm = m_aligned                 # single small block, one grid step
    else:
        tm = tile_m
    m_pad = _round_up(m, tm)

    pad_rows, pad_cols = m_pad - m, k_pad - input_dim
    if pad_rows or pad_cols:
        x2d = jnp.pad(x2d, ((0, pad_rows), (0, pad_cols)))
    grid = (m_pad // tm,)

    # ---- specs ----
    x_spec = pl.BlockSpec((tm, k_pad), lambda i: (i, 0))
    out_spec = pl.BlockSpec((tm, head_pad), lambda i: (i, 0))
    if _single_buffered_weights_supported():
        def const_spec(arr):
            return pl.BlockSpec(arr.shape, lambda i: (0, 0),
                                pipeline_mode=pl.Buffered(1))
    else:
        def const_spec(arr):
            return pl.BlockSpec(arr.shape, lambda i: (0, 0))

    in_specs, call_args = [x_spec], [x2d]
    for w, b in zip(ws_p, bs_p):
        in_specs += [const_spec(w), const_spec(b)]
        call_args += [w, b]
    in_specs += [const_spec(w_head), const_spec(b_head)]
    call_args += [w_head, b_head]

    kernel = functools.partial(_decoder_kernel, n_layers, output_dim, sig_start,
                               prepared["aligned_head"])

    out2d = pl.pallas_call(
        kernel,
        out_shape=jax.ShapeDtypeStruct((m_pad, head_pad), out_dtype),
        grid_spec=pltpu.PrefetchScalarGridSpec(
            num_scalar_prefetch=0,
            grid=grid,
            in_specs=in_specs,
            out_specs=out_spec,
        ),
        compiler_params=pltpu.CompilerParams(
            dimension_semantics=("parallel",),
            vmem_limit_bytes=32 * 1024 * 1024,   # safe on v5e / v6e / v7x
        ),
    )(*call_args)

    mu2d = out2d[:m, :output_dim]
    sigma2d = out2d[:m, sig_start:sig_start + output_dim]
    out_shape = tuple(input_shape[:-2]) + (-1, output_dim)
    return mu2d.reshape(out_shape), sigma2d.reshape(out_shape)


# ---------------------------------------------------------------------------
# Raw-parameter init (PyTorch nn.Linear-style) and pure-JAX reference.
# ---------------------------------------------------------------------------
def init_decoder_params(key, input_dim, layer_sizes, output_dim):
    params = {"input_dim": input_dim, "hidden_ws": [], "hidden_bs": []}
    dims = [input_dim] + list(layer_sizes)
    for i in range(len(layer_sizes)):
        key, kw, kb = jax.random.split(key, 3)
        bound = 1.0 / (dims[i] ** 0.5)
        params["hidden_ws"].append(
            jax.random.uniform(kw, (dims[i], dims[i + 1]), jnp.float32,
                               -bound, bound))
        params["hidden_bs"].append(
            jax.random.uniform(kb, (1, dims[i + 1]), jnp.float32, -bound, bound))
    bound = 1.0 / (layer_sizes[-1] ** 0.5)
    key, k1, k2, k3, k4 = jax.random.split(key, 5)
    params["w_mu"] = jax.random.uniform(
        k1, (layer_sizes[-1], output_dim), jnp.float32, -bound, bound)
    params["b_mu"] = jax.random.uniform(
        k2, (1, output_dim), jnp.float32, -bound, bound)
    params["w_sigma"] = jax.random.uniform(
        k3, (layer_sizes[-1], output_dim), jnp.float32, -bound, bound)
    params["b_sigma"] = jax.random.uniform(
        k4, (1, output_dim), jnp.float32, -bound, bound)
    return params


def _reference_forward(params, target_x, stochastic_rep, deterministic_rep=None):
    if deterministic_rep is not None:
        h = jnp.concatenate((stochastic_rep, deterministic_rep, target_x), -1)
    else:
        h = jnp.concatenate((stochastic_rep, target_x), -1)
    shp = h.shape
    h = h.reshape(-1, shp[-1])
    for w, b in zip(params["hidden_ws"], params["hidden_bs"]):
        h = jnp.maximum(h @ w + b, 0.0)
    mu = h @ params["w_mu"] + params["b_mu"]
    log_sigma = h @ params["w_sigma"] + params["b_sigma"]
    sigma = 0.1 + 0.9 * jax.nn.softplus(log_sigma)
    od = params["w_mu"].shape[1]
    out_shape = tuple(shp[:-2]) + (-1, od)
    return mu.reshape(out_shape), sigma.reshape(out_shape)


if __name__ == "__main__":
    key = jax.random.PRNGKey(0)

    # ---- Config A: small ANP shapes, f32 compute, tight check ----
    batch, n_points = 2, 8
    x_dim, latent_dim, det_dim = 2, 3, 3
    layer_sizes = [32, 32]
    output_dim = 2
    input_dim = x_dim + latent_dim + det_dim

    key, kp, kx, ks, kd = jax.random.split(key, 5)
    raw = init_decoder_params(kp, input_dim, layer_sizes, output_dim)
    target_x = jax.random.normal(kx, (batch, n_points, x_dim), jnp.float32)
    stochastic_rep = jax.random.normal(ks, (batch, n_points, latent_dim),
                                       jnp.float32)
    deterministic_rep = jax.random.normal(kd, (batch, n_points, det_dim),
                                          jnp.float32)

    prep_f32 = prepare_decoder_params(raw, use_bf16=False)   # one-time prep
    mu, sigma = decoder_forward(prep_f32, target_x, stochastic_rep,
                                deterministic_rep)
    jax.block_until_ready((mu, sigma))
    mu_ref, sigma_ref = _reference_forward(raw, target_x, stochastic_rep,
                                           deterministic_rep)
    assert mu.shape == (batch, n_points, output_dim)
    assert sigma.shape == (batch, n_points, output_dim)
    assert jnp.allclose(mu, mu_ref, atol=1e-5, rtol=1e-5)
    assert jnp.allclose(sigma, sigma_ref, atol=1e-5, rtol=1e-5)

    # ---- Config A again with the bf16 default (f32 accumulation; looser tol) ----
    prep_bf16 = prepare_decoder_params(raw)                  # use_bf16=True default
    mu_b, sigma_b = decoder_forward(prep_bf16, target_x, stochastic_rep,
                                    deterministic_rep)
    jax.block_until_ready((mu_b, sigma_b))
    assert jnp.allclose(mu_b, mu_ref, atol=5e-2, rtol=5e-2)
    assert jnp.allclose(sigma_b, sigma_ref, atol=5e-2, rtol=5e-2)

    # ---- Config B: no deterministic_rep path (2-way concat), f32 ----
    raw2 = init_decoder_params(kp, x_dim + latent_dim, layer_sizes, output_dim)
    prep2 = prepare_decoder_params(raw2, use_bf16=False)
    mu2, sigma2 = decoder_forward(prep2, target_x, stochastic_rep)
    jax.block_until_ready((mu2, sigma2))
    mu2_ref, sigma2_ref = _reference_forward(raw2, target_x, stochastic_rep)
    assert jnp.allclose(mu2, mu2_ref, atol=1e-5, rtol=1e-5)
    assert jnp.allclose(sigma2, sigma2_ref, atol=1e-5, rtol=1e-5)

    # ---- Config C: large output_dim (block-aligned head) + multi-step grid ----
    b3, n3, od3 = 4, 100, 80
    key, kp3, kx3, ks3 = jax.random.split(key, 4)
    raw3 = init_decoder_params(kp3, x_dim + latent_dim, [32, 48], od3)
    prep3 = prepare_decoder_params(raw3, use_bf16=False)
    tx3 = jax.random.normal(kx3, (b3, n3, x_dim), jnp.float32)
    sr3 = jax.random.normal(ks3, (b3, n3, latent_dim), jnp.float32)
    mu3, sigma3 = decoder_forward(prep3, tx3, sr3)
    jax.block_until_ready((mu3, sigma3))
    mu3_ref, sigma3_ref = _reference_forward(raw3, tx3, sr3)
    assert mu3.shape == (b3, n3, od3)
    assert jnp.allclose(mu3, mu3_ref, atol=1e-4, rtol=1e-4)
    assert jnp.allclose(sigma3, sigma3_ref, atol=1e-4, rtol=1e-4)

    print("KERNEL_OK")
</pallas_src>

<mosaic_0001>
module attributes {stable_mosaic.version = 11 : i64} {
  func.func @_probe_kernel(%arg0: i32, %arg1: memref<8x128xf32, #tpu.memory_space<vmem>>, %arg2: memref<8x128xf32, #tpu.memory_space<vmem>>) attributes {dimension_semantics = [#tpu.dimension_semantics<arbitrary>], iteration_bounds = array<i64: 2>, scalar_prefetch = 0 : i64, scratch_operands = 0 : i64, tpu.core_type = #tpu.core_type<tc>, window_params = [{pipeline_mode = #tpu.pipeline_mode<synchronous>, transform_indices = @transform_0, window_bounds = array<i64: 8, 128>}, {pipeline_mode = #tpu.pipeline_mode<synchronous>, transform_indices = @transform_1, window_bounds = array<i64: 8, 128>}]} {
    %c0 = arith.constant 0 : index
    %c0_0 = arith.constant 0 : index
    %0 = vector.load %arg1[%c0, %c0_0] : memref<8x128xf32, #tpu.memory_space<vmem>>, vector<8x128xf32>
    %cst = arith.constant 1.000000e+00 : f32
    %1 = vector.broadcast %cst : f32 to vector<8x128xf32>
    %2 = arith.addf %0, %1 : vector<8x128xf32>
    %c0_1 = arith.constant 0 : index
    %c0_2 = arith.constant 0 : index
    %3 = vector.load %arg2[%c0_1, %c0_2] : memref<8x128xf32, #tpu.memory_space<vmem>>, vector<8x128xf32>
    tpu.vector_store %arg2[%c0_1, %c0_2], %2 {strides = array<i32>} : memref<8x128xf32, #tpu.memory_space<vmem>>, vector<8x128xf32>,
    return
  }
  func.func @transform_0(%arg0: i32) -> (i32, i32) {
    %c0_i32 = arith.constant 0 : i32
    %c0_i32_0 = arith.constant 0 : i32
    %c0_i32_1 = arith.constant 0 : i32
    return %c0_i32, %c0_i32_0 : i32, i32
  }
  func.func @transform_1(%arg0: i32) -> (i32, i32) {
    %c0_i32 = arith.constant 0 : i32
    %c0_i32_0 = arith.constant 0 : i32
    %c0_i32_1 = arith.constant 0 : i32
    return %c0_i32, %c0_i32_0 : i32, i32
  }
}

module attributes {stable_mosaic.version = 11 : i64} {
  func.func @_decoder_kernel(%arg0: i32, %arg1: memref<16x8xf32, #tpu.memory_space<vmem>>, %arg2: memref<8x128xf32, #tpu.memory_space<vmem>>, %arg3: memref<1x128xf32, #tpu.memory_space<vmem>>, %arg4: memref<128x128xf32, #tpu.memory_space<vmem>>, %arg5: memref<1x128xf32, #tpu.memory_space<vmem>>, %arg6: memref<128x128xf32, #tpu.memory_space<vmem>>, %arg7: memref<1x128xf32, #tpu.memory_space<vmem>>, %arg8: memref<16x128xf32, #tpu.memory_space<vmem>>) attributes {dimension_semantics = [#tpu.dimension_semantics<parallel>], iteration_bounds = array<i64: 1>, scalar_prefetch = 0 : i64, scratch_operands = 0 : i64, tpu.core_type = #tpu.core_type<tc>, window_params = [{transform_indices = @transform_0, window_bounds = array<i64: 16, 8>}, {pipeline_mode = #tpu.pipeline_mode<synchronous>, transform_indices = @transform_1, window_bounds = array<i64: 8, 128>}, {pipeline_mode = #tpu.pipeline_mode<synchronous>, transform_indices = @transform_2, window_bounds = array<i64: 1, 128>}, {pipeline_mode = #tpu.pipeline_mode<synchronous>, transform_indices = @transform_3, window_bounds = array<i64: 128, 128>}, {pipeline_mode = #tpu.pipeline_mode<synchronous>, transform_indices = @transform_4, window_bounds = array<i64: 1, 128>}, {pipeline_mode = #tpu.pipeline_mode<synchronous>, transform_indices = @transform_5, window_bounds = array<i64: 128, 128>}, {pipeline_mode = #tpu.pipeline_mode<synchronous>, transform_indices = @transform_6, window_bounds = array<i64: 1, 128>}, {transform_indices = @transform_7, window_bounds = array<i64: 16, 128>}]} {
    %c0 = arith.constant 0 : index
    %c0_0 = arith.constant 0 : index
    %0 = vector.load %arg1[%c0, %c0_0] : memref<16x8xf32, #tpu.memory_space<vmem>>, vector<16x8xf32>
    %c0_1 = arith.constant 0 : index
    %c0_2 = arith.constant 0 : index
    %1 = vector.load %arg2[%c0_1, %c0_2] : memref<8x128xf32, #tpu.memory_space<vmem>>, vector<8x128xf32>
    %cst = arith.constant dense<0.000000e+00> : vector<16x128xf32>
    %2 = tpu.matmul %0, %1, %cst {dimension_numbers = #tpu.dot_dimension_numbers<[1], [0], [0], [1], [0, 0, 1, 1], [], []>} : vector<16x8xf32>, vector<8x128xf32>, vector<16x128xf32> -> vector<16x128xf32>
    %c0_3 = arith.constant 0 : index
    %c0_4 = arith.constant 0 : index
    %3 = vector.load %arg3[%c0_3, %c0_4] : memref<1x128xf32, #tpu.memory_space<vmem>>, vector<1x128xf32>
    %4 = vector.broadcast %3 : vector<1x128xf32> to vector<16x128xf32>
    %5 = arith.addf %2, %4 : vector<16x128xf32>
    %cst_5 = arith.constant 0.000000e+00 : f32
    %6 = vector.broadcast %cst_5 : f32 to vector<16x128xf32>
    %7 = arith.maximumf %5, %6 : vector<16x128xf32>
    %c0_6 = arith.constant 0 : index
    %c0_7 = arith.constant 0 : index
    %8 = vector.load %arg4[%c0_6, %c0_7] : memref<128x128xf32, #tpu.memory_space<vmem>>, vector<128x128xf32>
    %cst_8 = arith.constant dense<0.000000e+00> : vector<16x128xf32>
    %9 = tpu.matmul %7, %8, %cst_8 {dimension_numbers = #tpu.dot_dimension_numbers<[1], [0], [0], [1], [0, 0, 1, 1], [], []>} : vector<16x128xf32>, vector<128x128xf32>, vector<16x128xf32> -> vector<16x128xf32>
    %c0_9 = arith.constant 0 : index
    %c0_10 = arith.constant 0 : index
    %10 = vector.load %arg5[%c0_9, %c0_10] : memref<1x128xf32, #tpu.memory_space<vmem>>, vector<1x128xf32>
    %11 = vector.broadcast %10 : vector<1x128xf32> to vector<16x128xf32>
    %12 = arith.addf %9, %11 : vector<16x128xf32>
    %cst_11 = arith.constant 0.000000e+00 : f32
    %13 = vector.broadcast %cst_11 : f32 to vector<16x128xf32>
    %14 = arith.maximumf %12, %13 : vector<16x128xf32>
    %c0_12 = arith.constant 0 : index
    %c0_13 = arith.constant 0 : index
    %15 = vector.load %arg6[%c0_12, %c0_13] : memref<128x128xf32, #tpu.memory_space<vmem>>, vector<128x128xf32>
    %cst_14 = arith.constant dense<0.000000e+00> : vector<16x128xf32>
    %16 = tpu.matmul %14, %15, %cst_14 {dimension_numbers = #tpu.dot_dimension_numbers<[1], [0], [0], [1], [0, 0, 1, 1], [], []>} : vector<16x128xf32>, vector<128x128xf32>, vector<16x128xf32> -> vector<16x128xf32>
    %c0_15 = arith.constant 0 : index
    %c0_16 = arith.constant 0 : index
    %17 = vector.load %arg7[%c0_15, %c0_16] : memref<1x128xf32, #tpu.memory_space<vmem>>, vector<1x128xf32>
    %18 = vector.broadcast %17 : vector<1x128xf32> to vector<16x128xf32>
    %19 = arith.addf %16, %18 : vector<16x128xf32>
    %20 = tpu.iota {dimensions = array<i32: 1>} : vector<16x128xi32>
    %c2_i32 = arith.constant 2 : i32
    %21 = vector.broadcast %c2_i32 : i32 to vector<16x128xi32>
    %22 = arith.cmpi sge, %20, %21 : vector<16x128xi32>
    %c4_i32 = arith.constant 4 : i32
    %23 = vector.broadcast %c4_i32 : i32 to vector<16x128xi32>
    %24 = arith.cmpi slt, %20, %23 : vector<16x128xi32>
    %25 = arith.andi %22, %24 : vector<16x128xi1>
    %cst_17 = arith.constant 0.000000e+00 : f32
    %26 = vector.broadcast %cst_17 : f32 to vector<16x128xf32>
    %27 = arith.maximumf %19, %26 : vector<16x128xf32>
    %28 = math.absf %19 : vector<16x128xf32>
    %cst_18 = arith.constant 0.000000e+00 : f32
    %29 = vector.broadcast %cst_18 : f32 to vector<16x128xf32>
    %30 = arith.subf %29, %28 : vector<16x128xf32>
    %31 = math.exp %30 : vector<16x128xf32>
    %32 = math.log1p %31 : vector<16x128xf32>
    %33 = arith.addf %27, %32 : vector<16x128xf32>
    %cst_19 = arith.constant 0.899999976 : f32
    %34 = vector.broadcast %cst_19 : f32 to vector<16x128xf32>
    %35 = arith.mulf %34, %33 : vector<16x128xf32>
    %cst_20 = arith.constant 1.000000e-01 : f32
    %36 = vector.broadcast %cst_20 : f32 to vector<16x128xf32>
    %37 = arith.addf %36, %35 : vector<16x128xf32>
    %38 = arith.select %25, %37, %19 : vector<16x128xi1>, vector<16x128xf32>
    %c0_21 = arith.constant 0 : index
    %c0_22 = arith.constant 0 : index
    %39 = vector.load %arg8[%c0_21, %c0_22] : memref<16x128xf32, #tpu.memory_space<vmem>>, vector<16x128xf32>
    tpu.vector_store %arg8[%c0_21, %c0_22], %38 {strides = array<i32>} : memref<16x128xf32, #tpu.memory_space<vmem>>, vector<16x128xf32>,
    return
  }
  func.func @transform_0(%arg0: i32) -> (i32, i32) {
    %c0_i32 = arith.constant 0 : i32
    %c0_i32_0 = arith.constant 0 : i32
    return %arg0, %c0_i32 : i32, i32
  }
  func.func @transform_1(%arg0: i32) -> (i32, i32) {
    %c0_i32 = arith.constant 0 : i32
    %c0_i32_0 = arith.constant 0 : i32
    %c0_i32_1 = arith.constant 0 : i32
    return %c0_i32, %c0_i32_0 : i32, i32
  }
  func.func @transform_2(%arg0: i32) -> (i32, i32) {
    %c0_i32 = arith.constant 0 : i32
    %c0_i32_0 = arith.constant 0 : i32
    %c0_i32_1 = arith.constant 0 : i32
    return %c0_i32, %c0_i32_0 : i32, i32
  }
  func.func @transform_3(%arg0: i32) -> (i32, i32) {
    %c0_i32 = arith.constant 0 : i32
    %c0_i32_0 = arith.constant 0 : i32
    %c0_i32_1 = arith.constant 0 : i32
    return %c0_i32, %c0_i32_0 : i32, i32
  }
  func.func @transform_4(%arg0: i32) -> (i32, i32) {
    %c0_i32 = arith.constant 0 : i32
    %c0_i32_0 = arith.constant 0 : i32
    %c0_i32_1 = arith.constant 0 : i32
    return %c0_i32, %c0_i32_0 : i32, i32
  }
  func.func @transform_5(%arg0: i32) -> (i32, i32) {
    %c0_i32 = arith.constant 0 : i32
    %c0_i32_0 = arith.constant 0 : i32
    %c0_i32_1 = arith.constant 0 : i32
    return %c0_i32, %c0_i32_0 : i32, i32
  }
  func.func @transform_6(%arg0: i32) -> (i32, i32) {
    %c0_i32 = arith.constant 0 : i32
    %c0_i32_0 = arith.constant 0 : i32
    %c0_i32_1 = arith.constant 0 : i32
    return %c0_i32, %c0_i32_0 : i32, i32
  }
  func.func @transform_7(%arg0: i32) -> (i32, i32) {
    %c0_i32 = arith.constant 0 : i32
    %c0_i32_0 = arith.constant 0 : i32
    return %arg0, %c0_i32 : i32, i32
  }
}

</mosaic_0001>

<bundles_post_ra>
// kernel: tpu_custom_call.1
= control target key start
LH: loop header
LB: loop body
LE: loop exit
PB: predicated region body
PF: predicated region fallthrough
CT: control target
= control target key end

     0   :  { %6 = vsyncpa [#allocation3], 0  ;;  %s287_s0 = inlined_call_operand.hbm [shape: f32[8,128], index: 0, kind: input, shape index: {}]   ;;  %s288_s1 = inlined_call_operand.hbm [shape: f32[8,128], index: 1, kind: output, shape index: {}]  }
   0x1   :  { %7 = vsyncpa [#allocation4], 0  ;;  %s270_s6 = smov 0  }
   0x2 LB: > { %s149_s7 = sadd.s32 4294967295, %s256_s6   ;;  %p150_p0 = scmp.ge.s32.totalorder %s256_s6, 1  ;;  %s256_s6 = sphi %s270_s6, %s13_s6  }
   0x3   : > { %p60_p1 = scmp.lt.s32.totalorder %s256_s6, 3  ;;  %s72_s10 = sshll.u32 %s287_s0, 4  ;;  %s73_s10 = int_to_ptr.hbm [resolvable:$true] %s72_s10 }
   0x4   : > { %p170_p3 = scmp.eq.s32.totalorder %s149_s7, 0  ;;  %s258_s11 = smov [#allocation2]  }
   0x5   : > { %p61_p2 = pnand %p150_p0, %p60_p1  ;;  %s74_s12 = sshll.u32 %s258_s11, 4  ;;  %s75_s12 = int_to_ptr.vmem [resolvable:$true] %s74_s12 }
   0x7   : > { %p166_p4 = pneg %p61_p2  ;;  %87 = sbr.rel (%p61_p2) target bundleno = 20 (0x14), region = 24 }
   0x9   : > { %p167_p5 = pnand %p170_p3, %p166_p4 }
   0xb   : > { %169 = dma.hbm_to_vmem [thread:$0]  (!%p167_p5), %s73_s10, 128, %s75_s12, [#allocation3]  }
   0xc   : > { %247 = dma.done.wait (%p170_p3), [#allocation3], 128  }
   0xd   : > { %249 = vsyncadd (%p170_p3), [#allocation3], 4294967168  ;;  %s259_s13 = smov [#allocation5]   ;;  %s109_s17 = sshll.u32 %s288_s1, 4  ;;  %v98_v0 = vld [vmem:[#allocation2] sm:$0xff]  ;;  %s110_s17 = int_to_ptr.hbm [resolvable:$true] %s109_s17 }
   0xe   : > { %s107_s14 = sshll.u32 %s259_s13, 4  ;;  %p172_p6 = scmp.eq.s32.totalorder %s149_s7, 1  ;;  %v99_v1 = vadd.f32 1.0, %v98_v0  ;;  %s108_s14 = int_to_ptr.vmem [resolvable:$true] %s107_s14 }
  0x10   : > { %100 = vst [vmem:[#allocation5] sm:$0xff] %v99_v1 }
  0x11   : > { %163 = dma.vmem_to_hbm [thread:$0]  (%p172_p6), %s108_s14, 128, %s110_s17, [#allocation4]  }
  0x12   : > { %251 = dma.done.wait (%p172_p6), [#allocation4], 128  }
  0x13   : > { %253 = vsyncadd (%p172_p6), [#allocation4], 4294967168 }
  0x14 PF: > { %s13_s6 = sadd.s32 1, %s256_s6  }
  0x15   : > { %p10_p7 = scmp.ge.s32.totalorder %s13_s6, 4  }
  0x17   :  { %12 = sbr.rel (!%p10_p7) target bundleno = 2 (0x2), region = 53 }
  0x1c   :  { %123 = vsyncpa [#allocation3], 1 }
  0x1d   :  { %125 = vsyncpa [#allocation3 + $0x1], 1 }
  0x1e   :  { %126 = vsyncpa [#allocation4], 1 }
  0x1f   :  { %128 = vsyncpa [#allocation4 + $0x1], 1 }

// kernel: tpu_custom_call.1
= control target key start
LH: loop header
LB: loop body
LE: loop exit
PB: predicated region body
PF: predicated region fallthrough
CT: control target
= control target key end

     0   :  { %12 = vsyncpa [#allocation3], 0  ;;  %s468_s0 = inlined_call_operand.vmem [shape: f32[16,8], index: 0, kind: input, shape index: {}]   ;;  %s469_s1 = inlined_call_operand.vmem [shape: f32[8,128], index: 1, kind: input, shape index: {}]   ;;  %s470_s2 = inlined_call_operand.vmem [shape: f32[1,128], index: 2, kind: input, shape index: {}]   ;;  %s471_s3 = inlined_call_operand.hbm [shape: f32[128,128], index: 3, kind: input, shape index: {}]   ;;  %s472_s4 = inlined_call_operand.vmem [shape: f32[1,128], index: 4, kind: input, shape index: {}]   ;;  %s473_s5 = inlined_call_operand.hbm [shape: f32[128,128], index: 5, kind: input, shape index: {}]   ;;  %s474_s6 = inlined_call_operand.vmem [shape: f32[1,128], index: 6, kind: input, shape index: {}]   ;;  %s475_s7 = inlined_call_operand.hbm [shape: f32[16,128], index: 7, kind: output, shape index: {}]  }
   0x1   :  { %13 = vsyncpa [#allocation6], 0 }
   0x2   :  { %14 = vsyncpa [#allocation4], 0  ;;  %s25_s26 = sshll.u32 %s471_s3, 4  ;;  %s377_s27 = smov [#allocation2]   ;;  %s26_s26 = int_to_ptr.hbm [resolvable:$true] %s25_s26 }
   0x3   :  { %s27_s28 = sshll.u32 %s377_s27, 4  ;;  %s40_s8 = sshll.u32 %s473_s5, 4  ;;  %s28_s28 = int_to_ptr.vmem [resolvable:$true] %s27_s28  ;;  %s41_s8 = int_to_ptr.hbm [resolvable:$true] %s40_s8 }
   0x4   :  { %s378_s9 = smov 128   ;;  %s379_s10 = smov 8  }
   0x5   :  { %33 = dma.hbm_to_vmem [thread:$0]  %s26_s26, 2048, %s28_s28, [#allocation3], %s378_s9, %s378_s9, %s379_s10  }
   0x6   :  { %s380_s11 = smov [#allocation5]  }
   0x7   :  { %s42_s12 = sshll.u32 %s380_s11, 4  ;;  %s43_s12 = int_to_ptr.vmem [resolvable:$true] %s42_s12 }
   0x8   :  { %48 = dma.hbm_to_vmem [thread:$0]  %s41_s8, 2048, %s43_s12, [#allocation6], %s378_s9, %s378_s9, %s379_s10  }
   0x9   :  { %371 = dma.done.wait [#allocation3], 2048  }
   0xa   :  { %372 = vsyncadd [#allocation3], 4294965248 }
   0xb   :  { %373 = dma.done.wait [#allocation6], 2048  }
   0xc   :  { %374 = vsyncadd [#allocation6], 4294965248  ;;  %vm66_vm0 = vcmask 64512   ;;  %v61_v0 = vld [vmem:[%s469_s1] sm:$0xff]  ;;  %v113_v2 = vld [vmem:[#allocation2 + $0x78] sm:$0xff]  ;;  %v186_v58 = vlaneseq  ;;  %s235_s22 = sshll.u32 %s475_s7, 4  ;;  %s236_s22 = int_to_ptr.hbm [resolvable:$true] %s235_s22 }
   0xd   :  { %v59_v1 = vld [vmem:[%s468_s0] sm:$0xff]  ;;  %88 = vmatpush.msra.mxu0 %v61_v0  ;;  %v112_v3 = vld [vmem:[#allocation2 + $0x70] sm:$0xff]  ;;  %118 = vmatpush.msra.mxu1 %v113_v2  ;;  %v111_v4 = vld [vmem:[#allocation2 + $0x68] sm:$0xff] }
   0xe   :  { %249 = vmatmul.msk.f32.vlgmr.msra.gmra.mxu0 %vm66_vm0, %v59_v1  ;;  %251 = vmatpush.msra.mxu3 %v113_v2  ;;  %v110_v5 = vld [vmem:[#allocation2 + $0x60] sm:$0xff]  ;;  %v60_v6 = vld [vmem:[%s468_s0 + $0x8] sm:$0xff]  ;;  %v109_v7 = vld [vmem:[#allocation2 + $0x58] sm:$0xff]  ;;  %v187_v1 = vand.u32 127, %v186_v58 }
   0xf   :  { %119 = vmatpush.msra.mxu1 %v112_v3  ;;  %v108_v8 = vld [vmem:[#allocation2 + $0x50] sm:$0xff]  ;;  %v107_v9 = vld [vmem:[#allocation2 + $0x48] sm:$0xff]  ;;  %v106_v10 = vld [vmem:[#allocation2 + $0x40] sm:$0xff] }
  0x10   :  { %252 = vmatpush.msra.mxu3 %v112_v3  ;;  %v105_v11 = vld [vmem:[#allocation2 + $0x38] sm:$0xff]  ;;  %v104_v12 = vld [vmem:[#allocation2 + $0x30] sm:$0xff]  ;;  %v103_v13 = vld [vmem:[#allocation2 + $0x28] sm:$0xff]  ;;  %vm188_vm2 = vcmp.ge.s32.totalorder %v187_v1, 2  ;;  %vm189_vm3 = vcmp.lt.s32.totalorder %v187_v1, 4 }
  0x11   :  { %120 = vmatpush.msra.mxu1 %v111_v4  ;;  %v102_v14 = vld [vmem:[#allocation2 + $0x20] sm:$0xff]  ;;  %v101_v15 = vld [vmem:[#allocation2 + $0x18] sm:$0xff]  ;;  %v100_v16 = vld [vmem:[#allocation2 + $0x10] sm:$0xff] }
  0x12   :  { %253 = vmatpush.msra.mxu3 %v111_v4  ;;  %v99_v17 = vld [vmem:[#allocation2 + $0x8] sm:$0xff]  ;;  %v98_v18 = vld [vmem:[#allocation2] sm:$0xff]  ;;  %v158_v19 = vld [vmem:[#allocation5 + $0x78] sm:$0xff] }
  0x13   :  { %121 = vmatpush.msra.mxu1 %v110_v5  ;;  %v157_v20 = vld [vmem:[#allocation5 + $0x70] sm:$0xff]  ;;  %163 = vmatpush.msrb.mxu0 %v158_v19  ;;  %v156_v21 = vld [vmem:[#allocation5 + $0x68] sm:$0xff]  ;;  %v155_v22 = vld [vmem:[#allocation5 + $0x60] sm:$0xff] }
  0x14   :  { %254 = vmatpush.msra.mxu3 %v110_v5  ;;  %267 = vmatpush.msra.mxu2 %v158_v19  ;;  %v154_v23 = vld [vmem:[#allocation5 + $0x58] sm:$0xff]  ;;  %v153_v24 = vld [vmem:[#allocation5 + $0x50] sm:$0xff]  ;;  %v152_v25 = vld [vmem:[#allocation5 + $0x48] sm:$0xff] }
  0x15   :  { %122 = vmatpush.msra.mxu1 %v109_v7  ;;  %164 = vmatpush.msrb.mxu0 %v157_v20  ;;  %v151_v26 = vld [vmem:[#allocation5 + $0x40] sm:$0xff]  ;;  %v150_v27 = vld [vmem:[#allocation5 + $0x38] sm:$0xff]  ;;  %v149_v29 = vld [vmem:[#allocation5 + $0x30] sm:$0xff] }
  0x16   :  { %250 = vmatmul.msk.f32.gmra.mxu0 %vm66_vm0, %v60_v6  ;;  %255 = vmatpush.msra.mxu3 %v109_v7  ;;  %v288_v28 = vld [vmem:[%s470_s2] ss:$0 sm:$0xff]  ;;  %v148_v30 = vld [vmem:[#allocation5 + $0x28] sm:$0xff]  ;;  %v146_v35 = vld [vmem:[#allocation5 + $0x18] sm:$0xff] }
  0x17   :  { %123 = vmatpush.msra.mxu1 %v108_v8  ;;  %268 = vmatpush.msra.mxu2 %v157_v20  ;;  %v147_v33 = vld [vmem:[#allocation5 + $0x20] sm:$0xff]  ;;  %v145_v39 = vld [vmem:[#allocation5 + $0x10] sm:$0xff]  ;;  %v144_v40 = vld [vmem:[#allocation5 + $0x8] sm:$0xff] }
  0x18   :  { %256 = vmatpush.msra.mxu3 %v108_v8  ;;  %165 = vmatpush.msrb.mxu0 %v156_v21  ;;  %v143_v41 = vld [vmem:[#allocation5] sm:$0xff]  ;;  %vm454_vm4 = vmand %vm188_vm2, %vm189_vm3 }
  0x19   :  { %124 = vmatpush.msra.mxu1 %v107_v9  ;;  %269 = vmatpush.msra.mxu2 %v156_v21  ;;  %v289_v42 = vld [vmem:[%s472_s4] ss:$0 sm:$0xff]  ;;  %s381_s4 = smov [#allocation7]  }
  0x1a   :  { %257 = vmatpush.msra.mxu3 %v107_v9  ;;  %166 = vmatpush.msrb.mxu0 %v155_v22  ;;  %v290_v49 = vld [vmem:[%s474_s6] ss:$0 sm:$0xff]  ;;  %s233_s6 = sshll.u32 %s381_s4, 4  ;;  %s234_s6 = int_to_ptr.vmem [resolvable:$true] %s233_s6 }
  0x1b   :  { %125 = vmatpush.msra.mxu1 %v106_v10  ;;  %270 = vmatpush.msra.mxu2 %v155_v22 }
  0x1c   :  { %258 = vmatpush.msra.mxu3 %v106_v10  ;;  %167 = vmatpush.msrb.mxu0 %v154_v23 }
  0x1d   :  { %126 = vmatpush.msra.mxu1 %v105_v11  ;;  %271 = vmatpush.msra.mxu2 %v154_v23 }
  0x1e   :  { %259 = vmatpush.msra.mxu3 %v105_v11  ;;  %168 = vmatpush.msrb.mxu0 %v153_v24 }
  0x1f   :  { %127 = vmatpush.msra.mxu1 %v104_v12  ;;  %272 = vmatpush.msra.mxu2 %v153_v24 }
  0x20   :  { %260 = vmatpush.msra.mxu3 %v104_v12  ;;  %169 = vmatpush.msrb.mxu0 %v152_v25 }
  0x21   :  { %128 = vmatpush.msra.mxu1 %v103_v13  ;;  %273 = vmatpush.msra.mxu2 %v152_v25 }
  0x22   :  { %261 = vmatpush.msra.mxu3 %v103_v13  ;;  %170 = vmatpush.msrb.mxu0 %v151_v26 }
  0x23   :  { %129 = vmatpush.msra.mxu1 %v102_v14  ;;  %274 = vmatpush.msra.mxu2 %v151_v26 }
  0x24   :  { %262 = vmatpush.msra.mxu3 %v102_v14  ;;  %171 = vmatpush.msrb.mxu0 %v150_v27 }
  0x25   :  { %130 = vmatpush.msra.mxu1 %v101_v15  ;;  %275 = vmatpush.msra.mxu2 %v150_v27 }
  0x26   :  { %263 = vmatpush.msra.mxu3 %v101_v15  ;;  %172 = vmatpush.msrb.mxu0 %v149_v29 }
  0x27   :  { %131 = vmatpush.msra.mxu1 %v100_v16  ;;  %276 = vmatpush.msra.mxu2 %v149_v29 }
  0x28   :  { %264 = vmatpush.msra.mxu3 %v100_v16  ;;  %173 = vmatpush.msrb.mxu0 %v148_v30 }
  0x29   :  { %132 = vmatpush.msra.mxu1 %v99_v17  ;;  %277 = vmatpush.msra.mxu2 %v148_v30 }
  0x2a   :  { %265 = vmatpush.msra.mxu3 %v99_v17  ;;  %174 = vmatpush.msrb.mxu0 %v147_v33 }
  0x2b   :  { %133 = vmatpush.msra.mxu1 %v98_v18  ;;  %278 = vmatpush.msra.mxu2 %v147_v33 }
  0x2c   :  { %266 = vmatpush.msra.mxu3 %v98_v18  ;;  %175 = vmatpush.msrb.mxu0 %v146_v35 }
  0x2d   :  { %279 = vmatpush.msra.mxu2 %v146_v35 }
  0x2e   :  { %176 = vmatpush.msrb.mxu0 %v145_v39 }
  0x2f   :  { %280 = vmatpush.msra.mxu2 %v145_v39 }
  0x30   :  { %177 = vmatpush.msrb.mxu0 %v144_v40 }
  0x31   :  { %281 = vmatpush.msra.mxu2 %v144_v40 }
  0x32   :  { %178 = vmatpush.msrb.mxu0 %v143_v41 }
  0x33   :  { %282 = vmatpush.msra.mxu2 %v143_v41 }
  0x8b   :  { %v90_v31 = vpop.f32.mrf.mxu0 }
  0x8c   :  { %v91_v32 = vadd.f32 %v288_v28, %v90_v31 }
  0x8e   :  { %v96_v34 = vmax.f32 %v91_v32, 0.0 }
  0x90   :  { %134 = vmatmul.f32.vlgmr.msra.gmra.mxu1 %v96_v34 }
  0x93   :  { %v93_v36 = vpop.f32.mrf.mxu0 }
  0x94   :  { %v94_v37 = vadd.f32 %v288_v28, %v93_v36 }
  0x96   :  { %v97_v38 = vmax.f32 %v94_v37, 0.0 }
  0x98   :  { %137 = vmatmul.f32.vlgmr.msra.gmra.mxu3 %v97_v38 }
 0x10d   :  { %v135_v43 = vpop.f32.mrf.mxu1 }
 0x10e   :  { %v136_v44 = vadd.f32 %v289_v42, %v135_v43 }
 0x110   :  { %v141_v45 = vmax.f32 %v136_v44, 0.0 }
 0x112   :  { %179 = vmatmul.f32.vlgmr.msrb.gmra.mxu0 %v141_v45 }
 0x11b   :  { %v138_v46 = vpop.f32.mrf.mxu3 }
 0x11c   :  { %v139_v47 = vadd.f32 %v289_v42, %v138_v46 }
 0x11e   :  { %v142_v48 = vmax.f32 %v139_v47, 0.0 }
 0x120   :  { %182 = vmatmul.f32.vlgmr.msra.gmra.mxu2 %v142_v48 }
 0x18f   :  { %v180_v50 = vpop.f32.mrf.mxu0 }
 0x190   :  { %v181_v51 = vadd.f32 %v290_v49, %v180_v50 }
 0x192   :  { %v193_v52 = vand.u32 2147483647, %v181_v51  ;;  %v191_v5 = vmax.f32 %v181_v51, 0.0 }
 0x194   :  { %v195_v53 = vsub.f32 0.0, %v193_v52 }
 0x196   :  { %v197_v54 = vmul.f32 1.442695, %v195_v53 }
 0x198   :  { %291 = vpow2.f32 %v197_v54 }
 0x19e   :  { %v292_v55 = vpop.eup %291 }
 0x19f   :  { %v201_v56 = vadd.f32 1.0, %v292_v55  ;;  %v204_v57 = vmul.f32 -0.5, %v292_v55  ;;  %v207_v62 = vand.u32 2147483647, %v292_v55 }
 0x1a1   :  { %293 = vlog2.f32 %v201_v56  ;;  %v205_v60 = vadd.f32 1.0, %v204_v57  ;;  %vm208_vm1 = vcmp.lt.f32.partialorder %v207_v62, 0.0004427343 }
 0x1a3   :  { %v183_v59 = vpop.f32.mrf.mxu2  ;;  %v206_v3 = vmul.f32 %v292_v55, %v205_v60 }
 0x1a4   :  { %v184_v61 = vadd.f32 %v290_v49, %v183_v59 }
 0x1a6   :  { %v194_v63 = vand.u32 2147483647, %v184_v61  ;;  %v192_v21 = vmax.f32 %v184_v61, 0.0 }
 0x1a7   :  { %v294_v0 = vpop.eup %293 }
 0x1a8   :  { %v203_v2 = vmul.f32 0.6931472, %v294_v0  ;;  %v196_v4 = vsub.f32 0.0, %v194_v63 }
 0x1aa   :  { %v209_v6 = vsel %vm208_vm1, %v206_v3, %v203_v2  ;;  %v199_v7 = vmul.f32 1.442695, %v196_v4 }
 0x1ab   :  { %v219_v8 = vadd.f32 %v209_v6, %v191_v5 }
 0x1ac   :  { %295 = vpow2.f32 %v199_v7 }
 0x1ad   :  { %v221_v9 = vmul.f32 0.9, %v219_v8 }
 0x1af   :  { %v223_v11 = vadd.f32 0.1, %v221_v9 }
 0x1b1   :  { %v225_v12 = vsel %vm454_vm4, %v223_v11, %v181_v51 }
 0x1b2   :  { %v296_v13 = vpop.eup %295  ;;  %227 = vst [vmem:[#allocation7] sm:$0xff] %v225_v12 }
 0x1b3   :  { %v210_v14 = vadd.f32 1.0, %v296_v13  ;;  %v213_v15 = vmul.f32 -0.5, %v296_v13  ;;  %v216_v17 = vand.u32 2147483647, %v296_v13 }
 0x1b5   :  { %297 = vlog2.f32 %v210_v14  ;;  %v214_v16 = vadd.f32 1.0, %v213_v15  ;;  %vm217_vm5 = vcmp.lt.f32.partialorder %v216_v17, 0.0004427343 }
 0x1b7   :  { %v215_v20 = vmul.f32 %v296_v13, %v214_v16 }
 0x1bb   :  { %v298_v18 = vpop.eup %297 }
 0x1bc   :  { %v212_v19 = vmul.f32 0.6931472, %v298_v18 }
 0x1be   :  { %v218_v22 = vsel %vm217_vm5, %v215_v20, %v212_v19 }
 0x1bf   :  { %v220_v23 = vadd.f32 %v218_v22, %v192_v21 }
 0x1c1   :  { %v222_v24 = vmul.f32 0.9, %v220_v23 }
 0x1c3   :  { %v224_v25 = vadd.f32 0.1, %v222_v24 }
 0x1c5   :  { %v226_v26 = vsel %vm454_vm4, %v224_v25, %v184_v61 }
 0x1c6   :  { %228 = vst [vmem:[#allocation7 + $0x8] sm:$0xff] %v226_v26 }
 0x1c7   :  { %241 = dma.vmem_to_hbm [thread:$0]  %s234_s6, 256, %s236_s22, [#allocation4], %s378_s9, %s378_s9, %s379_s10  }
 0x1c8   :  { %375 = dma.done.wait [#allocation4], 256  }
 0x1c9   :  { %376 = vsyncadd [#allocation4], 4294967040 }
 0x1ca   :  { %246 = vsyncpa [#allocation3], 1 }
 0x1cb   :  { %247 = vsyncpa [#allocation6], 1 }
 0x1cc   :  { %248 = vsyncpa [#allocation4], 1 }

</bundles_post_ra>
